<compile_context>
chip_gen: v7x
topology: tpu7x:2x2x1
jax: 0.10.0
libtpu: 0.0.40
codegen_flags: <defaults>
</compile_context>

<pallas_src>
from functools import partial
import math

import jax
import jax.numpy as jnp
from jax.experimental import pallas as pl
from jax.experimental.pallas import tpu as pltpu

_EPS = 1e-20
_LANE = 128
_DEFAULT_BLOCK_BYTES = 4 * 1024 * 1024     # target padded-VMEM bytes per block
_VMEM_LIMIT_BYTES = 48 * 1024 * 1024       # safe on v5e/v6e (128 MiB) and v7x (64 MiB)


def _round_up(x: int, m: int) -> int:
    return ((x + m - 1) // m) * m


def _choose_tiles(pre: int, b: int, post: int, itemsize: int, target_bytes: int):
    """Pick (tile_pre, tile_post) for blocks of shape (tile_pre, B, tile_post).

    Sizing uses VMEM-padded bytes: the last two block dims (B, tile_post) map to
    (sublane, lane), so B pads to the sublane multiple and tile_post to 128.
    """
    sub_mult = 8 * max(1, 4 // itemsize)          # 8 (f32) / 16 (bf16) / 32 (i8)
    b_pad = _round_up(b, sub_mult)

    def padded_bytes(tp, tpo):
        return tp * b_pad * _round_up(tpo, _LANE) * itemsize

    # Prefer the full post extent (fully contiguous HBM DMA per block) if a
    # reasonably tall block still fits inside the target.
    if post <= _LANE or padded_bytes(8, post) <= target_bytes:
        tile_post = post
    else:
        cols = (target_bytes // (8 * b_pad * itemsize)) // _LANE * _LANE
        tile_post = min(max(_LANE, cols), _round_up(post, _LANE))

    tile_pre = max(1, target_bytes // (b_pad * _round_up(tile_post, _LANE) * itemsize))
    tile_pre = min(tile_pre, pre)
    if tile_pre > 8:
        tile_pre = (tile_pre // 8) * 8
    return tile_pre, tile_post


# --------------------------------------------------------------------------
# Pallas kernels (backward path)
# --------------------------------------------------------------------------
def _sumsq_kernel(g_ref, ss_ref, *, pre, post, tile_pre, tile_post,
                  mask_pre, mask_post):
    # g block: (tile_pre, B, tile_post).  Each grid point writes its own
    # (1, B, 1) partial sum -> fully parallel grid, no accumulator carry.
    g = g_ref[...].astype(jnp.float32)
    if mask_pre or mask_post:
        # Tail tiles read garbage out-of-bounds: zero those rows/cols before
        # squaring.  mask_pre / mask_post are trace-time Python bools, so the
        # masking code is only emitted when the shape actually has a tail.
        valid = None
        if mask_pre:
            rows = jax.lax.broadcasted_iota(jnp.int32, g.shape, 0)
            valid = rows < (pre - pl.program_id(0) * tile_pre)
        if mask_post:
            cols = jax.lax.broadcasted_iota(jnp.int32, g.shape, 2)
            in_cols = cols < (post - pl.program_id(1) * tile_post)
            valid = in_cols if valid is None else (valid & in_cols)
        g = jnp.where(valid, g, 0.0)
    s = jnp.sum(g * g, axis=2, keepdims=True)        # lane reduction
    ss_ref[...] = jnp.sum(s, axis=0, keepdims=True)  # (1, B, 1) partial sum


def _scale_kernel(g_ref, mask_ref, o_ref):
    # out[p, b, q] = g[p, b, q] * mask[b]; OOB tail writes are dropped.
    g = g_ref[...].astype(jnp.float32)
    o_ref[...] = (g * mask_ref[...]).astype(o_ref.dtype)


def _filter_x_grad(x_grad, batch_dim, threshold, *,
                   target_block_bytes=_DEFAULT_BLOCK_BYTES):
    """GradientFilterFunction.backward math for x_grad.

    Returns (filtered x_grad, scalar avg_mask).  Heavy per-element work runs in
    Pallas; the (B,)-sized median/mask math is plain JAX.
    """
    ndim = x_grad.ndim
    if batch_dim < 0:
        batch_dim += ndim
    orig_shape = x_grad.shape

    if x_grad.size == 0:
        return x_grad, jnp.float32(1.0)

    b = orig_shape[batch_dim]
    pre = math.prod(orig_shape[:batch_dim]) if batch_dim > 0 else 1
    post = math.prod(orig_shape[batch_dim + 1:]) if batch_dim < ndim - 1 else 1
    n = pre * post

    # Free (contiguous-collapse) reshape: no moveaxis / transpose HBM passes.
    g3 = x_grad.reshape(pre, b, post)

    itemsize = jnp.dtype(x_grad.dtype).itemsize
    tile_pre, tile_post = _choose_tiles(pre, b, post, itemsize, target_block_bytes)
    pre_tiles = pl.cdiv(pre, tile_pre)
    post_tiles = pl.cdiv(post, tile_post)
    mask_pre = (pre % tile_pre) != 0
    mask_post = (post % tile_post) != 0

    cparams = pltpu.CompilerParams(
        dimension_semantics=("parallel", "parallel"),
        vmem_limit_bytes=_VMEM_LIMIT_BYTES)

    # --- kernel 1: per-batch partial sums of squared grads -------------------
    partials = pl.pallas_call(
        partial(_sumsq_kernel, pre=pre, post=post, tile_pre=tile_pre,
                tile_post=tile_post, mask_pre=mask_pre, mask_post=mask_post),
        out_shape=jax.ShapeDtypeStruct((pre_tiles * post_tiles, b, 1), jnp.float32),
        grid=(pre_tiles, post_tiles),
        in_specs=[pl.BlockSpec((tile_pre, b, tile_post), lambda i, j: (i, 0, j))],
        out_specs=pl.BlockSpec((1, b, 1), lambda i, j: (i * post_tiles + j, 0, 0)),
        compiler_params=cparams,
    )(g3)

    # --- tiny (B,)-sized math: norm / lower median / masks (plain JAX) -------
    sumsq = jnp.sum(partials.reshape(-1, b), axis=0)                 # (B,)
    norm_of_batch = jnp.sqrt(sumsq / jnp.float32(n))                 # (B,)
    # torch.median returns the *lower* median for even-length inputs.
    median_norm = jnp.sort(norm_of_batch)[(b - 1) // 2]
    cutoff = median_norm * jnp.float32(threshold)
    inv_mask = (cutoff + norm_of_batch) / (cutoff + _EPS)            # (B,)
    mask = (1.0 / (inv_mask + _EPS)).reshape(1, b, 1)                # (1, B, 1)
    avg_mask = 1.0 / (jnp.mean(inv_mask) + _EPS)                     # scalar

    # --- kernel 2: scale x_grad by its per-batch mask -------------------------
    scaled = pl.pallas_call(
        _scale_kernel,
        out_shape=jax.ShapeDtypeStruct((pre, b, post), x_grad.dtype),
        grid=(pre_tiles, post_tiles),
        in_specs=[pl.BlockSpec((tile_pre, b, tile_post), lambda i, j: (i, 0, j)),
                  pl.BlockSpec((1, b, 1), lambda i, j: (0, 0, 0))],
        out_specs=pl.BlockSpec((tile_pre, b, tile_post), lambda i, j: (i, 0, j)),
        compiler_params=cparams,
    )(g3, mask)

    return scaled.reshape(orig_shape), avg_mask


# --------------------------------------------------------------------------
# custom_vjp wrapper (forward = identity, backward = Pallas gradient filter)
# --------------------------------------------------------------------------
@partial(jax.custom_vjp, nondiff_argnums=(2, 3))
def _gradient_filter(x, params, batch_dim, threshold):
    # Forward is a pure pass-through: no Pallas copy, no extra HBM traffic.
    return (x,) + tuple(params)


def _gradient_filter_fwd(x, params, batch_dim, threshold):
    return (x,) + tuple(params), None


def _gradient_filter_bwd(batch_dim, threshold, _res, cotangents):
    x_grad = cotangents[0]
    param_grads = cotangents[1:]
    x_grad, avg_mask = _filter_x_grad(x_grad, batch_dim, threshold)
    # One scalar multiply per (typically tiny) parameter grad: keep in XLA.
    new_param_grads = tuple((avg_mask * g).astype(g.dtype) for g in param_grads)
    return (x_grad, new_param_grads)


_gradient_filter.defvjp(_gradient_filter_fwd, _gradient_filter_bwd)


class GradientFilter:
    """JAX/Pallas port of the PyTorch GradientFilter module.

    Forward: identity pass-through of (x, *params).
    Backward: per-batch gradient-norm soft masking (Pallas kernels).
    """

    def __init__(self, batch_dim: int = 1, threshold: float = 10.0):
        self.batch_dim = batch_dim
        self.threshold = threshold

    def __call__(self, x, *params):
        return _gradient_filter(x, tuple(params), self.batch_dim, float(self.threshold))


# --------------------------------------------------------------------------
# Pure-JAX reference of GradientFilterFunction.backward (for verification)
# --------------------------------------------------------------------------
def _reference_filter(x_grad, batch_dim, threshold):
    norm_dims = tuple(d for d in range(x_grad.ndim) if d != batch_dim)
    norm_of_batch = jnp.sqrt(
        jnp.mean(x_grad.astype(jnp.float32) ** 2, axis=norm_dims, keepdims=True))
    b = x_grad.shape[batch_dim]
    median_norm = jnp.sort(norm_of_batch.reshape(-1))[(b - 1) // 2]
    cutoff = median_norm * jnp.float32(threshold)
    inv_mask = (cutoff + norm_of_batch) / (cutoff + _EPS)
    mask = 1.0 / (inv_mask + _EPS)
    avg_mask = 1.0 / (jnp.mean(inv_mask) + _EPS)
    return (x_grad.astype(jnp.float32) * mask).astype(x_grad.dtype), avg_mask


if __name__ == "__main__":
    key = jax.random.PRNGKey(0)
    k_x, k_w, k_b, k_gx, k_gw, k_gb, k_t1, k_t2 = jax.random.split(key, 8)

    # ---- test 1: module forward (identity) + full custom_vjp backward -------
    S, B, H = 8, 2, 32           # x = (seq, batch, hidden), batch_dim=1 default
    x = jax.random.normal(k_x, (S, B, H), dtype=jnp.float32)
    weight = jax.random.normal(k_w, (H, H), dtype=jnp.float32) * 0.02
    bias = jax.random.normal(k_b, (H,), dtype=jnp.float32) * 0.01

    gf = GradientFilter(batch_dim=1, threshold=10.0)
    out_x, out_w, out_b = gf(x, weight, bias)
    jax.block_until_ready((out_x, out_w, out_b))
    assert out_x.shape == x.shape and out_x.dtype == x.dtype
    assert bool(jnp.all(out_x == x))
    assert bool(jnp.all(out_w == weight))
    assert bool(jnp.all(out_b == bias))

    g_x = jax.random.normal(k_gx, (S, B, H), dtype=jnp.float32)
    g_x = g_x.at[:, 1, :].multiply(100.0)     # one pathological batch element
    g_w = jax.random.normal(k_gw, (H, H), dtype=jnp.float32)
    g_b = jax.random.normal(k_gb, (H,), dtype=jnp.float32)

    _outs, vjp_fn = jax.vjp(lambda xx, ww, bb: gf(xx, ww, bb), x, weight, bias)
    dx, dw, db = vjp_fn((g_x, g_w, g_b))
    jax.block_until_ready((dx, dw, db))

    ref_dx, ref_avg = _reference_filter(g_x, 1, 10.0)
    assert dx.shape == x.shape and dx.dtype == x.dtype
    assert bool(jnp.allclose(dx, ref_dx, rtol=1e-5, atol=1e-5))
    assert bool(jnp.allclose(dw, (ref_avg * g_w).astype(g_w.dtype), rtol=1e-5, atol=1e-5))
    assert bool(jnp.allclose(db, (ref_avg * g_b).astype(g_b.dtype), rtol=1e-5, atol=1e-5))

    # ---- test 2: multi-tile path with partial tail tiles (forced small blocks)
    g_tail = jax.random.normal(k_t1, (13, 2, 200), dtype=jnp.float32)
    g_tail = g_tail.at[:, 0, :].multiply(50.0)
    got, got_avg = _filter_x_grad(g_tail, 1, 10.0, target_block_bytes=16 * 1024)
    ref2, ref2_avg = _reference_filter(g_tail, 1, 10.0)
    jax.block_until_ready(got)
    assert bool(jnp.allclose(got, ref2, rtol=1e-5, atol=1e-5))
    assert bool(jnp.allclose(got_avg, ref2_avg, rtol=1e-5, atol=1e-6))

    # ---- test 3: batch_dim=0 layout (pre == 1) -------------------------------
    g_b0 = jax.random.normal(k_t2, (3, 7, 50), dtype=jnp.float32)
    g_b0 = g_b0.at[2].multiply(200.0)
    got3, got3_avg = _filter_x_grad(g_b0, 0, 10.0)
    ref3, ref3_avg = _reference_filter(g_b0, 0, 10.0)
    jax.block_until_ready(got3)
    assert bool(jnp.allclose(got3, ref3, rtol=1e-5, atol=1e-5))
    assert bool(jnp.allclose(got3_avg, ref3_avg, rtol=1e-5, atol=1e-6))

    print("KERNEL_OK")
</pallas_src>

<mosaic_0001>
module attributes {stable_mosaic.version = 11 : i64} {
  func.func @_sumsq_kernel(%arg0: i32, %arg1: i32, %arg2: memref<8x2x32xf32, #tpu.memory_space<vmem>>, %arg3: memref<1x2x1xf32, #tpu.memory_space<vmem>>) attributes {dimension_semantics = [#tpu.dimension_semantics<parallel>, #tpu.dimension_semantics<parallel>], iteration_bounds = array<i64: 1, 1>, scalar_prefetch = 0 : i64, scratch_operands = 0 : i64, tpu.core_type = #tpu.core_type<tc>, window_params = [{transform_indices = @transform_0, window_bounds = array<i64: 8, 2, 32>}, {transform_indices = @transform_1, window_bounds = array<i64: 1, 2, 1>}]} {
    %c0 = arith.constant 0 : index
    %c0_0 = arith.constant 0 : index
    %c0_1 = arith.constant 0 : index
    %0 = vector.load %arg2[%c0, %c0_0, %c0_1] : memref<8x2x32xf32, #tpu.memory_space<vmem>>, vector<8x2x32xf32>
    %1 = arith.mulf %0, %0 : vector<8x2x32xf32>
    %cst = arith.constant dense<0.000000e+00> : vector<8x2xf32>
    %2 = vector.multi_reduction <add>, %1, %cst [2] : vector<8x2x32xf32> to vector<8x2xf32>
    %3 = vector.shape_cast %2 : vector<8x2xf32> to vector<8x2x1xf32>
    %cst_2 = arith.constant dense<0.000000e+00> : vector<2x1xf32>
    %4 = vector.multi_reduction <add>, %3, %cst_2 [0] : vector<8x2x1xf32> to vector<2x1xf32>
    %5 = vector.shape_cast %4 : vector<2x1xf32> to vector<1x2x1xf32>
    %c0_3 = arith.constant 0 : index
    %c0_4 = arith.constant 0 : index
    %c0_5 = arith.constant 0 : index
    %6 = vector.load %arg3[%c0_3, %c0_4, %c0_5] : memref<1x2x1xf32, #tpu.memory_space<vmem>>, vector<1x2x1xf32>
    tpu.vector_store %arg3[%c0_3, %c0_4, %c0_5], %5 {strides = array<i32>} : memref<1x2x1xf32, #tpu.memory_space<vmem>>, vector<1x2x1xf32>,
    return
  }
  func.func @transform_0(%arg0: i32, %arg1: i32) -> (i32, i32, i32) {
    %c0_i32 = arith.constant 0 : i32
    %c0_i32_0 = arith.constant 0 : i32
    return %arg0, %c0_i32, %arg1 : i32, i32, i32
  }
  func.func @transform_1(%arg0: i32, %arg1: i32) -> (i32, i32, i32) {
    %c1_i32 = arith.constant 1 : i32
    %0 = arith.muli %arg0, %c1_i32 : i32
    %1 = arith.addi %0, %arg1 : i32
    %c0_i32 = arith.constant 0 : i32
    %c0_i32_0 = arith.constant 0 : i32
    %c0_i32_1 = arith.constant 0 : i32
    return %1, %c0_i32, %c0_i32_0 : i32, i32, i32
  }
}

</mosaic_0001>

<bundles_post_ra>
// kernel: tpu_custom_call.1
= control target key start
LH: loop header
LB: loop body
LE: loop exit
PB: predicated region body
PF: predicated region fallthrough
CT: control target
= control target key end

     0   :  { %6 = vsyncpa [#allocation3], 0  ;;  %s143_s6 = smov [#allocation2]   ;;  %s187_s0 = inlined_call_operand.hbm [shape: f32[8,2,32], index: 0, kind: input, shape index: {}]   ;;  %s188_s1 = inlined_call_operand.vmem [shape: f32[1,2,1], index: 1, kind: output, shape index: {}]  }
   0x1   :  { %s12_s7 = sshll.u32 %s143_s6, 4  ;;  %s119_s10 = scalar_lea.hbm %s187_s0, 256  ;;  %s13_s7 = int_to_ptr.vmem [resolvable:$true] %s12_s7 }
   0x2   :  { %p120_p0 = scmp.ne.s32.totalorder %s187_s0, %s119_s10  ;;  %p123_p1 = scmp.lt.u32.totalorder %s119_s10, %s187_s0 }
   0x4   :  { %p125_p2 = pnand %p123_p1, %p120_p0 }
   0x6   :  { %128 = shalt.err (!%p125_p2)
}
   0x7   :  { %s129_s15 = scalar_lea.vmem %s13_s7, 256  ;;  %p134_p4 = scmp.lt.s32.totalorder %s13_s7, %s13_s7 }
   0x8   :  { %p130_p3 = scmp.ne.s32.totalorder %s13_s7, %s129_s15  ;;  %p135_p5 = scmp.lt.s32.totalorder %s129_s15, %s129_s15 }
   0xa   :  { %p136_p6 = por %p135_p5, %p134_p4 }
   0xc   :  { %p137_p7 = pnand %p136_p6, %p130_p3 }
   0xe   :  { %140 = shalt.err (!%p137_p7)
}
   0xf   :  { %s144_s16 = smov 32   ;;  %s145_s17 = smov 2  }
  0x10   :  { %18 = dma.hbm_to_vmem [thread:$0]  %s187_s0, 256, %s13_s7, [#allocation3], %s144_s16, %s144_s16, %s145_s17  }
  0x11   :  { %141 = dma.done.wait [#allocation3], 256  }
  0x12   :  { %142 = vsyncadd [#allocation3], 4294967040  ;;  %vm49_vm0 = vcmask 254976   ;;  %v33_v0 = vld [vmem:[#allocation2] sm:$0x3]  ;;  %vm74_vm1 = vcmask 1041408  }
  0x13   :  { %v35_v1 = vld [vmem:[#allocation2 + $0x4] sm:$0x3]  ;;  %v34_v2 = vld [vmem:[#allocation2 + $0x2] sm:$0x3]  ;;  %v41_v3 = vmul.f32 %v33_v0, %v33_v0  ;;  %v36_v6 = vld [vmem:[#allocation2 + $0x6] sm:$0x3] }
  0x14   :  { %v43_v4 = vmul.f32 %v35_v1, %v35_v1  ;;  %v42_v5 = vmul.f32 %v34_v2, %v34_v2  ;;  %v44_v7 = vmul.f32 %v36_v6, %v36_v6  ;;  %v37_v8 = vld [vmem:[#allocation2 + $0x8] sm:$0x3]  ;;  %v38_v9 = vld [vmem:[#allocation2 + $0xa] sm:$0x3]  ;;  %v39_v16 = vld [vmem:[#allocation2 + $0xc] sm:$0x3] }
  0x15   :  { %v50_v10 = vsel %vm49_vm0, %v41_v3, 0.0  ;;  %v45_v14 = vmul.f32 %v37_v8, %v37_v8  ;;  %v46_v15 = vmul.f32 %v38_v9, %v38_v9  ;;  %v40_v17 = vld [vmem:[#allocation2 + $0xe] sm:$0x3]  ;;  %v47_v20 = vmul.f32 %v39_v16, %v39_v16 }
  0x16   :  { %v56_v11 = vsel %vm49_vm0, %v43_v4, 0.0  ;;  %51 = vadd.xlane.f32.xlu0 %v50_v10  ;;  %v53_v12 = vsel %vm49_vm0, %v42_v5, 0.0  ;;  %v59_v13 = vsel %vm49_vm0, %v44_v7, 0.0  ;;  %v48_v21 = vmul.f32 %v40_v17, %v40_v17 }
  0x17   :  { %57 = vadd.xlane.f32.xlu1 %v56_v11  ;;  %v62_v18 = vsel %vm49_vm0, %v45_v14, 0.0  ;;  %v65_v19 = vsel %vm49_vm0, %v46_v15, 0.0  ;;  %v68_v22 = vsel %vm49_vm0, %v47_v20, 0.0  ;;  %vm90_vm2 = vcmask 1024  }
  0x18   :  { %v71_v23 = vsel %vm49_vm0, %v48_v21, 0.0 }
  0x1a   :  { %54 = vadd.xlane.f32.xlu0 %v53_v12 }
  0x1b   :  { %60 = vadd.xlane.f32.xlu1 %v59_v13 }
  0x1e   :  { %63 = vadd.xlane.f32.xlu0 %v62_v18 }
  0x1f   :  { %66 = vadd.xlane.f32.xlu1 %v65_v19 }
  0x22   :  { %69 = vadd.xlane.f32.xlu0 %v68_v22 }
  0x23   :  { %72 = vadd.xlane.f32.xlu1 %v71_v23 }
  0xa3   :  { %v52_v24 = vpop.xlane.xlu0 %51 }
  0xa4   :  { %v58_v25 = vpop.xlane.xlu1 %57  ;;  %v75_v28 = vsel %vm74_vm1, %v52_v24, 0.0 }
  0xa5   :  { %v78_v31 = vsel %vm74_vm1, %v58_v25, 0.0 }
  0xa7   :  { %v55_v26 = vpop.xlane.xlu0 %54 }
  0xa8   :  { %v61_v27 = vpop.xlane.xlu1 %60  ;;  %v76_v29 = vsel %vm74_vm1, %v55_v26, 0.0 }
  0xa9   :  { %v77_v30 = vadd.f32 %v76_v29, %v75_v28  ;;  %v80_v32 = vsel %vm74_vm1, %v61_v27, 0.0 }
  0xab   :  { %v79_v33 = vadd.f32 %v78_v31, %v77_v30  ;;  %v64_v34 = vpop.xlane.xlu0 %63 }
  0xac   :  { %v67_v35 = vpop.xlane.xlu1 %66  ;;  %v82_v36 = vsel %vm74_vm1, %v64_v34, 0.0 }
  0xad   :  { %v81_v37 = vadd.f32 %v80_v32, %v79_v33  ;;  %v84_v38 = vsel %vm74_vm1, %v67_v35, 0.0 }
  0xaf   :  { %v83_v39 = vadd.f32 %v82_v36, %v81_v37  ;;  %v70_v40 = vpop.xlane.xlu0 %69 }
  0xb0   :  { %v73_v41 = vpop.xlane.xlu1 %72  ;;  %v86_v42 = vsel %vm74_vm1, %v70_v40, 0.0 }
  0xb1   :  { %v85_v43 = vadd.f32 %v84_v38, %v83_v39  ;;  %v88_v44 = vsel %vm74_vm1, %v73_v41, 0.0 }
  0xb3   :  { %v87_v45 = vadd.f32 %v86_v42, %v85_v43 }
  0xb5   :  { %v89_v46 = vadd.f32 %v88_v44, %v87_v45 }
  0xb7   :  { %91 = vst.msk [vmem:[%s188_s1] sm:$0x3] %vm90_vm2, %v89_v46 }
  0xb8   :  { %107 = vsyncpa [#allocation3], 1 }

</bundles_post_ra>
